<compile_context>
chip_gen: v6e
topology: v6e:2x2x1
jax: 0.10.0
libtpu: 0.0.40
codegen_flags: <defaults>
</compile_context>

<pallas_src>
import jax
import jax.numpy as jnp
from jax.experimental import pallas as pl
from jax.experimental.pallas import tpu as pltpu


# ---------------------------------------------------------------------------
# Kernels
# ---------------------------------------------------------------------------
def _encode_tile(x_ref, w_enc_t_ref, b_enc_ref):
    """ReLU(x @ W_enc.T tile + b_enc_eff tile), f32 result."""
    f_pre = jnp.dot(x_ref[...], w_enc_t_ref[...],
                    preferred_element_type=jnp.float32)
    return jnp.maximum(f_pre + b_enc_ref[...], 0.0)


def _ae_kernel_f32_out(x_ref, bias_ref, w_enc_t_ref, b_enc_ref, w_dec_t_ref,
                       xhat_ref, f_ref):
    """x_hat output is f32 -> accumulate partial decodes directly into the
    resident output block; no scratch accumulator needed."""
    s = pl.program_id(1)

    @pl.when(s == 0)
    def _init():
        xhat_ref[...] = jnp.zeros_like(xhat_ref)

    f = _encode_tile(x_ref, w_enc_t_ref, b_enc_ref)
    f_ref[...] = f.astype(f_ref.dtype)

    xhat_ref[...] += jnp.dot(f.astype(w_dec_t_ref.dtype), w_dec_t_ref[...],
                             preferred_element_type=jnp.float32)

    @pl.when(s == pl.num_programs(1) - 1)
    def _finalize():
        xhat_ref[...] += bias_ref[...]          # decoder bias, f32


def _ae_kernel_narrow_out(x_ref, bias_ref, w_enc_t_ref, b_enc_ref, w_dec_t_ref,
                          xhat_ref, f_ref, acc_ref):
    """x_hat output dtype is narrower than f32 -> keep an f32 VMEM accumulator
    and cast once in the epilogue."""
    s = pl.program_id(1)

    @pl.when(s == 0)
    def _init():
        acc_ref[...] = jnp.zeros_like(acc_ref)

    f = _encode_tile(x_ref, w_enc_t_ref, b_enc_ref)
    f_ref[...] = f.astype(f_ref.dtype)

    acc_ref[...] += jnp.dot(f.astype(w_dec_t_ref.dtype), w_dec_t_ref[...],
                            preferred_element_type=jnp.float32)

    @pl.when(s == pl.num_programs(1) - 1)
    def _finalize():
        xhat_ref[...] = (acc_ref[...] + bias_ref[...]).astype(xhat_ref.dtype)


# ---------------------------------------------------------------------------
# Tiling helpers
# ---------------------------------------------------------------------------
def _round_up(n, m):
    return (n + m - 1) // m * m


def _pick_tile(total, preferred, align):
    """Largest aligned tile <= preferred.  Prefers an exact divisor of `total`
    (no padding); otherwise the caller zero-pads `total` up to a multiple of
    the returned tile.  Never silently returns the full extent for large
    non-divisible dims (that would blow VMEM on real SAE sizes)."""
    if total <= align:
        return total                       # full-extent block is always legal
    t = min(_round_up(preferred, align), _round_up(total, align))
    t -= t % align
    for cand in range(t, align - 1, -align):
        if total % cand == 0:
            return cand                    # exact divisor -> no padding
    return t                               # no aligned divisor -> pad


# ---------------------------------------------------------------------------
# Wrapper
# ---------------------------------------------------------------------------
def autoencoder_forward(x, bias, w_enc_t, b_enc, w_dec_t, *,
                        tile_b=None, tile_s=None,
                        vmem_limit_bytes=48 * 1024 * 1024):
    """Pallas AutoEncoder forward; returns (x_hat, f) == forward(output_features=True).

    Weights must be passed pre-transposed (transpose once, outside the hot
    loop): w_enc_t = encoder.weight.T with shape (D, S), w_dec_t =
    decoder.weight.T with shape (S, D).  For best throughput pass x and both
    weights already cast to bf16 (outputs follow x.dtype, accumulation is f32).
    """
    B, D = x.shape
    S = w_enc_t.shape[1]
    assert w_enc_t.shape == (D, S)
    assert w_dec_t.shape == (S, D)
    assert bias.shape == (D,)
    assert b_enc.shape == (S,)

    compute_dtype = x.dtype
    out_dtype = x.dtype
    dtype_bytes = jnp.dtype(compute_dtype).itemsize

    # dtype-aware batch-tile alignment: 8 (f32), 16 (bf16), 32 (int8/fp8).
    align_b = max(8, 32 // max(dtype_bytes, 1))
    if tile_b is None:
        tile_b = _pick_tile(B, 512, align_b)     # big batch tile = weight reuse
    if tile_s is None:
        tile_s = _pick_tile(S, 256, 128)         # modest S tile (v7x VMEM safe)

    B_pad = _round_up(B, tile_b)
    S_pad = _round_up(S, tile_s)

    # Cast weights once (no-op when caller already passes compute_dtype).
    w_enc_t = w_enc_t.astype(compute_dtype)
    w_dec_t = w_dec_t.astype(compute_dtype)

    # Fold the pre-encoder bias into an effective encoder bias (f32, outside
    # the kernel):  (x - bias) @ W_enc.T + b_enc == x @ W_enc.T + b_enc_eff.
    bias32 = bias.astype(jnp.float32)
    b_enc_eff = b_enc.astype(jnp.float32) - bias32 @ w_enc_t.astype(jnp.float32)

    x_in = x.astype(compute_dtype)
    if B_pad != B:
        x_in = jnp.pad(x_in, ((0, B_pad - B), (0, 0)))
    if S_pad != S:
        w_enc_t = jnp.pad(w_enc_t, ((0, 0), (0, S_pad - S)))
        w_dec_t = jnp.pad(w_dec_t, ((0, S_pad - S), (0, 0)))
        b_enc_eff = jnp.pad(b_enc_eff, ((0, S_pad - S),))

    bias2 = bias32.reshape(1, D)
    b_enc2 = b_enc_eff.reshape(1, S_pad)

    grid = (B_pad // tile_b, S_pad // tile_s)

    acc_in_output = jnp.dtype(out_dtype) == jnp.dtype(jnp.float32)
    kernel = _ae_kernel_f32_out if acc_in_output else _ae_kernel_narrow_out
    scratch_shapes = [] if acc_in_output else [pltpu.VMEM((tile_b, D), jnp.float32)]

    out_shapes = (
        jax.ShapeDtypeStruct((B_pad, D), out_dtype),       # x_hat
        jax.ShapeDtypeStruct((B_pad, S_pad), out_dtype),   # f
    )

    x_hat, f = pl.pallas_call(
        kernel,
        out_shape=out_shapes,
        grid_spec=pltpu.PrefetchScalarGridSpec(
            num_scalar_prefetch=0,
            grid=grid,
            in_specs=[
                # x / bias are constant in the S index -> stay VMEM-resident.
                pl.BlockSpec((tile_b, D), lambda i, j: (i, 0)),        # x
                pl.BlockSpec((1, D), lambda i, j: (0, 0)),             # bias (f32)
                # Only weight / encoder-bias tiles stream per S step.
                pl.BlockSpec((D, tile_s), lambda i, j: (0, j)),        # W_enc.T tile
                pl.BlockSpec((1, tile_s), lambda i, j: (0, j)),        # b_enc_eff tile
                pl.BlockSpec((tile_s, D), lambda i, j: (j, 0)),        # W_dec.T tile
            ],
            out_specs=[
                pl.BlockSpec((tile_b, D), lambda i, j: (i, 0)),        # x_hat (resident)
                pl.BlockSpec((tile_b, tile_s), lambda i, j: (i, j)),   # f
            ],
            scratch_shapes=scratch_shapes,
        ),
        compiler_params=pltpu.CompilerParams(
            dimension_semantics=("parallel", "arbitrary"),
            vmem_limit_bytes=vmem_limit_bytes),
    )(x_in, bias2, w_enc_t, b_enc2, w_dec_t)

    if B_pad != B:
        x_hat = x_hat[:B]
        f = f[:B]
    if S_pad != S:
        f = f[:, :S]
    return x_hat, f


# ---------------------------------------------------------------------------
# Reference + demo
# ---------------------------------------------------------------------------
def _reference_forward(x, bias, w_enc, b_enc, w_dec):
    f = jnp.maximum((x - bias) @ w_enc.T + b_enc, 0.0)
    x_hat = f @ w_dec.T + bias
    return x_hat, f


if __name__ == "__main__":
    # Small, TPU-tile-aligned shapes consistent with the module:
    # x in R^{B x activation_dim}, dictionary of dict_size atoms.
    B, activation_dim, dict_size = 32, 128, 256

    key = jax.random.PRNGKey(0)
    kx, kb, kwe, kbe, kwd = jax.random.split(key, 5)

    x = jax.random.normal(kx, (B, activation_dim), dtype=jnp.float32)

    # Parameters mirroring the nn.Module (bias made nonzero here so the
    # bias-folding path is actually exercised; __init__ uses zeros).
    bias = 0.1 * jax.random.normal(kb, (activation_dim,), dtype=jnp.float32)
    w_enc = 0.1 * jax.random.normal(kwe, (dict_size, activation_dim), dtype=jnp.float32)
    b_enc = 0.01 * jax.random.normal(kbe, (dict_size,), dtype=jnp.float32)
    w_dec = jax.random.normal(kwd, (activation_dim, dict_size), dtype=jnp.float32)
    w_dec = w_dec / jnp.linalg.norm(w_dec, axis=0, keepdims=True)

    # Transpose once, outside the per-call hot path.
    w_enc_t = jnp.asarray(w_enc.T)   # (D, S)
    w_dec_t = jnp.asarray(w_dec.T)   # (S, D)

    x_hat_ref, f_ref = _reference_forward(x, bias, w_enc, b_enc, w_dec)

    # 1) f32 path: accumulates directly into the resident x_hat output block
    #    (no scratch accumulator).  2 batch programs x 2 S programs.
    x_hat, f = autoencoder_forward(x, bias, w_enc_t, b_enc, w_dec_t,
                                   tile_b=16, tile_s=128)
    jax.block_until_ready((x_hat, f))
    assert jnp.allclose(x_hat, x_hat_ref, atol=1e-4, rtol=1e-4)
    assert jnp.allclose(f, f_ref, atol=1e-4, rtol=1e-4)

    # 2) bf16 fast path: x and weights cast to bf16 once outside the kernel,
    #    f32 MXU accumulation inside (narrow-output kernel variant with the
    #    f32 VMEM scratch).
    x_hat_bf, f_bf = autoencoder_forward(
        x.astype(jnp.bfloat16), bias,
        w_enc_t.astype(jnp.bfloat16), b_enc, w_dec_t.astype(jnp.bfloat16),
        tile_b=16, tile_s=128)
    jax.block_until_ready((x_hat_bf, f_bf))
    assert jnp.allclose(x_hat_bf.astype(jnp.float32), x_hat_ref, atol=5e-2, rtol=5e-2)
    assert jnp.allclose(f_bf.astype(jnp.float32), f_ref, atol=5e-2, rtol=5e-2)

    print("KERNEL_OK")
</pallas_src>

<mosaic_0001>
module attributes {stable_mosaic.version = 11 : i64} {
  func.func @_ae_kernel_f32_out(%arg0: i32, %arg1: i32, %arg2: memref<16x128xf32, #tpu.memory_space<vmem>>, %arg3: memref<1x128xf32, #tpu.memory_space<vmem>>, %arg4: memref<128x128xf32, #tpu.memory_space<vmem>>, %arg5: memref<1x128xf32, #tpu.memory_space<vmem>>, %arg6: memref<128x128xf32, #tpu.memory_space<vmem>>, %arg7: memref<16x128xf32, #tpu.memory_space<vmem>>, %arg8: memref<16x128xf32, #tpu.memory_space<vmem>>) attributes {dimension_semantics = [#tpu.dimension_semantics<parallel>, #tpu.dimension_semantics<arbitrary>], iteration_bounds = array<i64: 2, 2>, scalar_prefetch = 0 : i64, scratch_operands = 0 : i64, tpu.core_type = #tpu.core_type<tc>, window_params = [{transform_indices = @transform_0, window_bounds = array<i64: 16, 128>}, {pipeline_mode = #tpu.pipeline_mode<synchronous>, transform_indices = @transform_1, window_bounds = array<i64: 1, 128>}, {transform_indices = @transform_2, window_bounds = array<i64: 128, 128>}, {transform_indices = @transform_3, window_bounds = array<i64: 1, 128>}, {transform_indices = @transform_4, window_bounds = array<i64: 128, 128>}, {transform_indices = @transform_5, window_bounds = array<i64: 16, 128>}, {transform_indices = @transform_6, window_bounds = array<i64: 16, 128>}]} {
    %c0_i32 = arith.constant 0 : i32
    %0 = arith.cmpi eq, %arg1, %c0_i32 : i32
    %1 = arith.extui %0 : i1 to i32
    %c0_i32_0 = arith.constant 0 : i32
    %2 = arith.cmpi ne, %1, %c0_i32_0 : i32
    scf.if %2 {
      %cst_17 = arith.constant 0.000000e+00 : f32
      %20 = vector.broadcast %cst_17 : f32 to vector<16x128xf32>
      %c0_18 = arith.constant 0 : index
      %c0_19 = arith.constant 0 : index
      %21 = vector.load %arg7[%c0_18, %c0_19] : memref<16x128xf32, #tpu.memory_space<vmem>>, vector<16x128xf32>
      tpu.vector_store %arg7[%c0_18, %c0_19], %20 {strides = array<i32>} : memref<16x128xf32, #tpu.memory_space<vmem>>, vector<16x128xf32>,
    } else {
    }
    %c0 = arith.constant 0 : index
    %c0_1 = arith.constant 0 : index
    %3 = vector.load %arg2[%c0, %c0_1] : memref<16x128xf32, #tpu.memory_space<vmem>>, vector<16x128xf32>
    %c0_2 = arith.constant 0 : index
    %c0_3 = arith.constant 0 : index
    %4 = vector.load %arg4[%c0_2, %c0_3] : memref<128x128xf32, #tpu.memory_space<vmem>>, vector<128x128xf32>
    %cst = arith.constant dense<0.000000e+00> : vector<16x128xf32>
    %5 = tpu.matmul %3, %4, %cst {dimension_numbers = #tpu.dot_dimension_numbers<[1], [0], [0], [1], [0, 0, 1, 1], [], []>} : vector<16x128xf32>, vector<128x128xf32>, vector<16x128xf32> -> vector<16x128xf32>
    %c0_4 = arith.constant 0 : index
    %c0_5 = arith.constant 0 : index
    %6 = vector.load %arg5[%c0_4, %c0_5] : memref<1x128xf32, #tpu.memory_space<vmem>>, vector<1x128xf32>
    %7 = vector.broadcast %6 : vector<1x128xf32> to vector<16x128xf32>
    %8 = arith.addf %5, %7 : vector<16x128xf32>
    %cst_6 = arith.constant 0.000000e+00 : f32
    %9 = vector.broadcast %cst_6 : f32 to vector<16x128xf32>
    %10 = arith.maximumf %8, %9 : vector<16x128xf32>
    %c0_7 = arith.constant 0 : index
    %c0_8 = arith.constant 0 : index
    %11 = vector.load %arg8[%c0_7, %c0_8] : memref<16x128xf32, #tpu.memory_space<vmem>>, vector<16x128xf32>
    tpu.vector_store %arg8[%c0_7, %c0_8], %10 {strides = array<i32>} : memref<16x128xf32, #tpu.memory_space<vmem>>, vector<16x128xf32>,
    %c0_9 = arith.constant 0 : index
    %c0_10 = arith.constant 0 : index
    %12 = vector.load %arg7[%c0_9, %c0_10] : memref<16x128xf32, #tpu.memory_space<vmem>>, vector<16x128xf32>
    %c0_11 = arith.constant 0 : index
    %c0_12 = arith.constant 0 : index
    %13 = vector.load %arg6[%c0_11, %c0_12] : memref<128x128xf32, #tpu.memory_space<vmem>>, vector<128x128xf32>
    %cst_13 = arith.constant dense<0.000000e+00> : vector<16x128xf32>
    %14 = tpu.matmul %10, %13, %cst_13 {dimension_numbers = #tpu.dot_dimension_numbers<[1], [0], [0], [1], [0, 0, 1, 1], [], []>} : vector<16x128xf32>, vector<128x128xf32>, vector<16x128xf32> -> vector<16x128xf32>
    %15 = arith.addf %12, %14 : vector<16x128xf32>
    %c0_14 = arith.constant 0 : index
    %c0_15 = arith.constant 0 : index
    %16 = vector.load %arg7[%c0_14, %c0_15] : memref<16x128xf32, #tpu.memory_space<vmem>>, vector<16x128xf32>
    tpu.vector_store %arg7[%c0_14, %c0_15], %15 {strides = array<i32>} : memref<16x128xf32, #tpu.memory_space<vmem>>, vector<16x128xf32>,
    %c1_i32 = arith.constant 1 : i32
    %17 = arith.cmpi eq, %arg1, %c1_i32 : i32
    %18 = arith.extui %17 : i1 to i32
    %c0_i32_16 = arith.constant 0 : i32
    %19 = arith.cmpi ne, %18, %c0_i32_16 : i32
    scf.if %19 {
      %c0_17 = arith.constant 0 : index
      %c0_18 = arith.constant 0 : index
      %20 = vector.load %arg7[%c0_17, %c0_18] : memref<16x128xf32, #tpu.memory_space<vmem>>, vector<16x128xf32>
      %c0_19 = arith.constant 0 : index
      %c0_20 = arith.constant 0 : index
      %21 = vector.load %arg3[%c0_19, %c0_20] : memref<1x128xf32, #tpu.memory_space<vmem>>, vector<1x128xf32>
      %22 = vector.broadcast %21 : vector<1x128xf32> to vector<16x128xf32>
      %23 = arith.addf %20, %22 : vector<16x128xf32>
      %c0_21 = arith.constant 0 : index
      %c0_22 = arith.constant 0 : index
      %24 = vector.load %arg7[%c0_21, %c0_22] : memref<16x128xf32, #tpu.memory_space<vmem>>, vector<16x128xf32>
      tpu.vector_store %arg7[%c0_21, %c0_22], %23 {strides = array<i32>} : memref<16x128xf32, #tpu.memory_space<vmem>>, vector<16x128xf32>,
    } else {
    }
    return
  }
  func.func @transform_0(%arg0: i32, %arg1: i32) -> (i32, i32) {
    %c0_i32 = arith.constant 0 : i32
    %c0_i32_0 = arith.constant 0 : i32
    return %arg0, %c0_i32 : i32, i32
  }
  func.func @transform_1(%arg0: i32, %arg1: i32) -> (i32, i32) {
    %c0_i32 = arith.constant 0 : i32
    %c0_i32_0 = arith.constant 0 : i32
    %c0_i32_1 = arith.constant 0 : i32
    return %c0_i32, %c0_i32_0 : i32, i32
  }
  func.func @transform_2(%arg0: i32, %arg1: i32) -> (i32, i32) {
    %c0_i32 = arith.constant 0 : i32
    %c0_i32_0 = arith.constant 0 : i32
    return %c0_i32, %arg1 : i32, i32
  }
  func.func @transform_3(%arg0: i32, %arg1: i32) -> (i32, i32) {
    %c0_i32 = arith.constant 0 : i32
    %c0_i32_0 = arith.constant 0 : i32
    return %c0_i32, %arg1 : i32, i32
  }
  func.func @transform_4(%arg0: i32, %arg1: i32) -> (i32, i32) {
    %c0_i32 = arith.constant 0 : i32
    %c0_i32_0 = arith.constant 0 : i32
    return %arg1, %c0_i32 : i32, i32
  }
  func.func @transform_5(%arg0: i32, %arg1: i32) -> (i32, i32) {
    %c0_i32 = arith.constant 0 : i32
    %c0_i32_0 = arith.constant 0 : i32
    return %arg0, %c0_i32 : i32, i32
  }
  func.func @transform_6(%arg0: i32, %arg1: i32) -> (i32, i32) {
    %c0_i32 = arith.constant 0 : i32
    return %arg0, %arg1 : i32, i32
  }
}

</mosaic_0001>

<bundles_post_ra>
// kernel: tpu_custom_call.1
= control target key start
LH: loop header
LB: loop body
LE: loop exit
PB: predicated region body
PF: predicated region fallthrough
CT: control target
= control target key end

     0   :  { %s1884_s0 = inlined_call_operand.hbm [shape: f32[32,128], index: 0, kind: input, shape index: {}]   ;;  %s1885_s1 = inlined_call_operand.vmem [shape: f32[1,128], index: 1, kind: input, shape index: {}]   ;;  %s1886_s2 = inlined_call_operand.hbm [shape: f32[128,256], index: 2, kind: input, shape index: {}]   ;;  %s1887_s3 = inlined_call_operand.vmem [shape: f32[1,256], index: 3, kind: input, shape index: {}]   ;;  %s1888_s4 = inlined_call_operand.hbm [shape: f32[256,128], index: 4, kind: input, shape index: {}]   ;;  %s1889_s5 = inlined_call_operand.hbm [shape: f32[32,128], index: 5, kind: output, shape index: {0}]   ;;  %s1890_s6 = inlined_call_operand.hbm [shape: f32[32,256], index: 6, kind: output, shape index: {1}]  }
   0x1   :  { %1913 = sst [smem:[#allocation29_spill]] %s1884_s0 }
   0x2   :  { %1914 = sst [smem:[#allocation30_spill]] %s1885_s1 }
   0x3   :  { %1915 = sst [smem:[#allocation31_spill]] %s1886_s2 }
   0x4   :  { %1916 = sst [smem:[#allocation32_spill]] %s1887_s3 }
   0x5   :  { %1917 = sst [smem:[#allocation33_spill]] %s1889_s5 }
   0x6   :  { %1918 = sst [smem:[#allocation34_spill]] %s1890_s6 }
   0x7   :  { %12 = vsyncpa [#allocation3], 0 }
   0x8   :  { %14 = vsyncpa [#allocation3 + $0x1], 0 }
   0x9   :  { %15 = vsyncpa [#allocation6], 0 }
   0xa   :  { %17 = vsyncpa [#allocation6 + $0x1], 0 }
   0xb   :  { %18 = vsyncpa [#allocation4], 0 }
   0xc   :  { %20 = vsyncpa [#allocation4 + $0x1], 0 }
   0xd   :  { %21 = vsyncpa [#allocation10], 0 }
   0xe   :  { %23 = vsyncpa [#allocation10 + $0x1], 0  ;;  %s1420_s21 = smov 0   ;;  %s1422_s22 = smov 0  }
   0xf   :  { %s1424_s23 = smov 0   ;;  %s1426_s24 = smov 0  }
  0x10   :  { %s1428_s25 = smov 0   ;;  %s1430_s26 = smov 0  }
  0x11   :  { %s1432_s27 = smov 0   ;;  %s1434_s28 = smov 0  }
  0x12   :  { %s1436_s29 = smov 0   ;;  %s1438_s30 = smov 0  }
  0x13   :  { %s1440_s7 = smov 0   ;;  %s1442_s8 = smov 0  }
  0x14   :  { %s1444_s9 = smov 0   ;;  %s1446_s10 = smov 0  }
  0x15 LB: > { %1919 = sst [smem:[#allocation15_spill]] %s1327_s23  ;;  %s1891_s11 = sadd.s32 1, %s1363_s8  ;;  %s1371_s10 = sphi %s1446_s10, %s29_s10   ;;  %s1367_s9 = sphi %s1444_s9, %s1984_s9   ;;  %s1363_s8 = sphi %s1442_s8, %s1975_s8   ;;  %s1359_s7 = sphi %s1440_s7, %s1974_s7   ;;  %s1355_s30 = sphi %s1438_s30, %s1973_s30   ;;  %s1351_s29 = sphi %s1436_s29, %s1983_s29   ;;  %s1347_s28 = sphi %s1434_s28, %s1982_s28   ;;  %s1343_s27 = sphi %s1432_s27, %s1981_s27   ;;  %s1339_s26 = sphi %s1430_s26, %s1971_s26   ;;  %s1335_s25 = sphi %s1428_s25, %s1980_s25   ;;  %s1331_s24 = sphi %s1426_s24, %s1979_s24   ;;  %s1327_s23 = sphi %s1424_s23, %s1969_s23   ;;  %s1323_s22 = sphi %s1422_s22, %s1978_s22   ;;  %s1319_s21 = sphi %s1420_s21, %s1977_s21  }
  0x16   : > { %1920 = sst [smem:[#allocation16_spill]] %s1339_s26  ;;  %p56_p0 = scmp.eq.s32.totalorder %s1371_s10, 0 }
  0x17   : > { %1921 = sst [smem:[#allocation17_spill]] %s1343_s27  ;;  %p1494_p1 = scmp.ge.s32.totalorder %s1891_s11, 2 }
  0x18   : > { %1922 = sst [smem:[#allocation18_spill]] %s1355_s30  ;;  %p102_p2 = scmp.ne.s32.totalorder %s1339_s26, %s1335_s25 }
  0x19   : > { %1923 = sst [smem:[#allocation19_spill]] %s1359_s7  ;;  %p108_p3 = scmp.ne.s32.totalorder %s1335_s25, %s1331_s24 }
  0x1a   : > { %1924 = sst [smem:[#allocation20_spill]] %s1363_s8  ;;  %p1902_p4 = scmp.lt.s32.totalorder %s1371_s10, 4 }
  0x1b   : > { %1925 = sst [smem:[#allocation21_spill]] %s1367_s9  ;;  %p104_p5 = por %p102_p2, %p56_p0 }
  0x1c   : > { %s262_s14 = sand.u32 1, %s1371_s10   ;;  %s264_s15 = sand.u32 1, %s1339_s26  }
  0x1d   : > { %s1508_s16 = sshll.u32 %s264_s15, 7  ;;  %s828_s17 = sshll.u32 %s1363_s8, 7 }
  0x1e   : > { %s1927_s2 = sld [smem:[#allocation31_spill]]  ;;  %s266_s11 = scalar_lea.vmem [#allocation5], %s1508_s16 }
  0x1f   : > { %s272_s6 = sshll.u32 %s266_s11, 4  ;;  %p1517_p6 = pnand %p1902_p4, %p104_p5  ;;  %s273_s6 = int_to_ptr.vmem [resolvable:$true] %s272_s6 }
  0x20   : > { %p832_p7 = scmp.ge.s32.totalorder %s1371_s10, 1  ;;  %s1522_s5 = scalar_lea.sflag [#allocation6], %s262_s14 }
  0x21   : > { %p1900_p8 = pneg %p1517_p6  ;;  %s1122_s15 = scalar_lea.vmem %s273_s6, 2048 }
  0x22   : > { %p1123_p9 = scmp.ne.s32.totalorder %s273_s6, %s1122_s15  ;;  %s1373_s11 = smov [#allocation5]  }
  0x24   : > { %s271_s20 = scalar_lea.hbm %s1927_s2, %s828_s17  ;;  %p1125_p10 = pnand %p1123_p9, %p1900_p8 }
  0x25   : > { %s1127_s17 = sshll.u32 %s1373_s11, 4  ;;  %s1128_s17 = int_to_ptr.vmem [resolvable:$false] %s1127_s17 }
  0x26   : > { %p1126_p11 = pneg %p1125_p10  ;;  %s1129_s18 = scalar_lea.vmem %s1128_s17, 4096 }
  0x27   : > { %p1130_p12 = scmp.lt.s32.totalorder %s273_s6, %s1128_s17  ;;  %p1131_p13 = scmp.lt.s32.totalorder %s1129_s18, %s1122_s15 }
  0x29   : > { %p1132_p2 = por %p1131_p13, %p1130_p12 }
  0x2b   : > { %p1133_p5 = pnand %p1132_p2, %p1126_p11 }
  0x2d   : > { %1136 = shalt.err (!%p1133_p5)
}
  0x2e   : > { %s1374_s19 = smov 256   ;;  %s1894_s14 = smov 128  }
  0x2f   : > { %s1896_s15 = smov 8   ;;  %p307_p9 = scmp.lt.s32.totalorder %s1371_s10, 5 }
  0x30   : > { %977 = dma.hbm_to_vmem [thread:$0]  (!%p1517_p6), %s271_s20, 2048, %s273_s6, %s1522_s5, %s1374_s19, %s1894_s14, %s1896_s15  }
  0x31   : > { %p1537_p10 = pnand %p832_p7, %p307_p9  ;;  %s1542_s17 = sadd.s32 4294967295, %s1371_s10  }
  0x32   : > { %s821_s18 = sadd.s32 4294967294, %s1371_s10   ;;  %s1930_s2 = sadd.s32 1, %s1363_s8 }
  0x33   : > { %s1986_s2 = smov (%p1494_p1, %s1930_s2), 0  ;;  %s41_s6 = sadd.s32 1, %s1367_s9 }
  0x34   : > { %1931 = sst [smem:[#allocation22_spill]] %s1986_s2  ;;  %s48_s20 = sadd.s32 1, %s1351_s29 }
  0x35   : > { %s1988_s6 = smov (!%p1494_p1, %s41_s6), %s1367_s9  ;;  %p55_p7 = scmp.ne.s32.totalorder %s1351_s29, %s1347_s28 }
  0x36   : > { %p61_p11 = scmp.ne.s32.totalorder %s1347_s28, %s1343_s27  ;;  %p43_p12 = scmp.ge.s32.totalorder %s1988_s6, 2 }
  0x37   : > { %p62_p13 = scmp.eq.s32.totalorder %s1542_s17, 0  ;;  %p1566_p2 = por %p56_p0, %p55_p7 }
  0x38   : > { %s92_s14 = ssub.s32 %s1363_s8, %s1986_s2  ;;  %s1990_s6 = smov (%p43_p12, %s1988_s6), 0 }
  0x39   : > { %1933 = sst [smem:[#allocation23_spill]] %s1990_s6  ;;  %p1577_p1 = por %p62_p13, %p61_p11 }
  0x3a   : > { %p93_p5 = scmp.eq.s32.totalorder %s92_s14, 0  ;;  %s45_s15 = ssub.s32 %s1367_s9, %s1990_s6 }
  0x3b   : > { %p1586_p0 = por %p108_p3, %p62_p13  ;;  %p46_p9 = scmp.eq.s32.totalorder %s45_s15, 0 }
  0x3c   : > { %p184_p12 = scmp.eq.s32.totalorder %s1542_s17, 3  ;;  %s1937_s2 = sadd.s32 1, %s1339_s26 }
  0x3d   : > { %s1935_s7 = scalar_select %p1586_p0, 1, 0 }
  0x3e   : > { %s1594_s1 = scalar_select %p93_p5, %s1339_s26, %s1937_s2  }
  0x3f   : > { %1936 = sst [smem:[#allocation24_spill]] %s1935_s7  ;;  %p1602_p8 = por %p184_p12, %p55_p7 }
  0x40   : > { %1938 = sst [smem:[#allocation25_spill]] %s1594_s1  ;;  %p190_p4 = scmp.eq.s32.totalorder %s821_s18, 3 }
  0x41   : > { %s1597_s3 = scalar_select %p46_p9, %s1351_s29, %s48_s20  }
  0x42   : > { %s1940_s30 = scalar_select %p1602_p8, 1, 0 }
  0x43   : > { %1939 = sst [smem:[#allocation26_spill]] %s1597_s3  ;;  %s198_s24 = sor.u32 %s92_s14, %s45_s15 }
  0x44   : > { %s201_s6 = sadd.s32 1, %s1327_s23  ;;  %p1610_p3 = por %p190_p4, %p61_p11 }
  0x45   : > { %p199_p13 = scmp.eq.s32.totalorder %s198_s24, 0  ;;  %p211_p5 = scmp.ne.s32.totalorder %s1327_s23, %s1323_s22 }
  0x46   : > { %s1941_s7 = scalar_select %p1610_p3, 1, 0 }
  0x47   : > { %p217_p9 = scmp.ne.s32.totalorder %s1323_s22, %s1319_s21  ;;  %p1621_p7 = por %p211_p5, %p184_p12 }
  0x48   : > { %1942 = sst [smem:[#allocation27_spill]] %s1941_s7  ;;  %s241_s14 = sand.u32 1, %s1351_s29  }
  0x49   : > { %s1619_s2 = scalar_select %p199_p13, %s1327_s23, %s201_s6  }
  0x4a   : > { %p1625_p8 = por %p217_p9, %p190_p4  ;;  %s851_s15 = sshll.u32 %s1367_s9, 8 }
  0x4b   : > { %1943 = sst [smem:[#allocation28_spill]] %s1619_s2  ;;  %s824_s3 = sshll.u32 %s241_s14, 4 }
  0x4c   : > { %s1945_s18 = scalar_select %p1625_p8, 1, 0 }
  0x4d   : > { %s1946_s0 = sld [smem:[#allocation29_spill]]  ;;  %s245_s24 = scalar_lea.vmem [#allocation2], %s824_s3 }
  0x4e   : > { %s252_s27 = sshll.u32 %s245_s24, 4  ;;  %p1947_p11 = scmp.lt.s32.totalorder %s1371_s10, 4  ;;  %s253_s27 = int_to_ptr.vmem [resolvable:$true] %s252_s27 }
  0x4f   : > { %s852_s2 = sshll.u32 %s1363_s8, 11  ;;  %s242_s23 = scalar_lea.sflag [#allocation3], %s241_s14 }
  0x50   : > { %p1638_p13 = pnand %p1947_p11, %p1566_p2  ;;  %s1150_s9 = scalar_lea.vmem %s253_s27, 256 }
  0x51   : > { %p1151_p12 = scmp.ne.s32.totalorder %s253_s27, %s1150_s9  ;;  %s1377_s1 = smov [#allocation2]  }
  0x52   : > { %p1139_p4 = pneg %p1638_p13  ;;  %s1155_s26 = sshll.u32 %s1377_s1, 4  ;;  %s1156_s26 = int_to_ptr.vmem [resolvable:$false] %s1155_s26 }
  0x53   : > { %s251_s7 = scalar_lea.hbm %s1946_s0, %s851_s15  ;;  %s1157_s3 = scalar_lea.vmem %s1156_s26, 512 }
  0x54   : > { %p1153_p5 = pnand %p1151_p12, %p1139_p4  ;;  %p1158_p8 = scmp.lt.s32.totalorder %s253_s27, %s1156_s26 }
  0x55   : > { %p1159_p3 = scmp.lt.s32.totalorder %s1157_s3, %s1150_s9 }
  0x56   : > { %p1154_p9 = pneg %p1153_p5 }
  0x57   : > { %p1160_p2 = por %p1159_p3, %p1158_p8 }
  0x59   : > { %p1161_p11 = pnand %p1160_p2, %p1154_p9 }
  0x5b   : > { %1164 = shalt.err (!%p1161_p11)
}
  0x5c   : > { %s1949_s19 = smov 8   ;;  %s1950_s15 = smov 128  }
  0x5d   : > { %974 = dma.hbm_to_vmem [thread:$0]  (!%p1638_p13), %s251_s7, 256, %s253_s27, %s242_s23, %s1950_s15, %s1950_s15, %s1949_s19  }
  0x5e   : > { %s298_s0 = scalar_lea.hbm %s1888_s4, %s852_s2  ;;  %s292_s1 = scalar_lea.vmem [#allocation7], %s1508_s16 }
  0x5f   : > { %s299_s8 = sshll.u32 %s292_s1, 4  ;;  %p1951_p8 = pneg %p1517_p6  ;;  %s300_s8 = int_to_ptr.vmem [resolvable:$true] %s299_s8 }
  0x60   : > { %s1178_s26 = scalar_lea.vmem %s300_s8, 2048  ;;  %s1378_s9 = smov [#allocation7]  }
  0x61   : > { %p1179_p4 = scmp.ne.s32.totalorder %s300_s8, %s1178_s26  ;;  %s1183_s6 = sshll.u32 %s1378_s9, 4  ;;  %s1184_s6 = int_to_ptr.vmem [resolvable:$false] %s1183_s6 }
  0x62   : > { %s1185_s3 = scalar_lea.vmem %s1184_s6, 4096  ;;  %p1186_p5 = scmp.lt.s32.totalorder %s300_s8, %s1184_s6 }
  0x63   : > { %p1181_p3 = pnand %p1179_p4, %p1951_p8  ;;  %p1187_p9 = scmp.lt.s32.totalorder %s1185_s3, %s1178_s26 }
  0x65   : > { %p1182_p12 = pneg %p1181_p3  ;;  %p1188_p13 = por %p1187_p9, %p1186_p5 }
  0x67   : > { %p1189_p2 = pnand %p1188_p13, %p1182_p12 }
  0x69   : > { %1192 = shalt.err (!%p1189_p2)
}
  0x6a   : > { %980 = dma.hbm_to_vmem [thread:$0]  (!%p1517_p6), %s298_s0, 2048, %s300_s8, %s1522_s5, %s1950_s15, %s1950_s15, %s1949_s19  }
  0x6b   : > { %311 = sbr.rel (%p1537_p10) target bundleno = 628 (0x274), region = 40  ;;  %s1666_s23 = sand.u32 (!%p1537_p10), 1, %s1347_s28  }
  0x6c   : > { %s833_s27 = sshll.u32 (!%p1537_p10), %s1666_s23, 4  ;;  %s314_s7 = scalar_lea.sflag (!%p1537_p10), [#allocation3], %s1666_s23 }
  0x6d   : > { %s1670_s16 = scalar_lea.vmem (!%p1537_p10), [#allocation2], %s833_s27 }
  0x70   : > { %1302 = dma.done.wait (%p1577_p1), %s314_s7, 256  }
  0x71   : > { %1304 = vsyncadd (%p1577_p1), %s314_s7, 4294967040  ;;  %s322_s5 = sand.u32 1, %s1542_s17   ;;  %s324_s8 = sand.u32 1, %s1335_s25  }
  0x72   : > { %s834_s13 = sshll.u32 %s324_s8, 7  ;;  %s323_s11 = scalar_lea.sflag [#allocation6], %s322_s5 }
  0x73   : > { %s1678_s2 = scalar_lea.vmem [#allocation5], %s834_s13 }
  0x74   : > { %1306 = dma.done.wait (%p1586_p0), %s323_s11, 4096  }
  0x75   : > { %1308 = vsyncadd (%p1586_p0), %s323_s11, 4294963200  ;;  %s1953_s19 = sld [smem:[#allocation18_spill]]  ;;  %s379_s12 = sand.u32 1, %s1323_s22  }
  0x76   : > { %s837_s15 = sshll.u32 %s379_s12, 4  ;;  %s1954_s1 = sld [smem:[#allocation32_spill]] }
  0x77   : > { %s1695_s9 = scalar_lea.vmem [#allocation7], %s834_s13  ;;  %s1697_s6 = scalar_lea.vmem [#allocation8], %s833_s27 }
  0x78   : > { %s1699_s3 = scalar_lea.vmem [#allocation9], %s837_s15 }
  0x7b   : > { %p383_p6 = scmp.lt.s32.totalorder %s1953_s19, 1  ;;  %p838_p10 = scmp.ne.s32.totalorder %s1953_s19, 0 }
  0x7d   : > { %s1689_s14 = scalar_select %p383_p6, %s1953_s19, 1 }
  0x7e   : > { %392 = sbr.rel (%p838_p10) target bundleno = 133 (0x85), region = 56 }
  0x7f   : > { %s385_s26 = scalar_lea.vmem %s1954_s1, %s1689_s14 }
  0x83   : > { %v1379_v0 = vmov 0.0  }
  0x84   : > { %393 = vst [vmem:[%s1697_s6] sm:$0xff] %v1379_v0  ;;  %394 = vst [vmem:[%s1697_s6 + $0x8] sm:$0xff] %v1379_v0 }
  0x85 PF: > { %v412_v1 = vld [vmem:[%s1678_s2 + $0x78] sm:$0xff]  ;;  %v411_v2 = vld [vmem:[%s1678_s2 + $0x70] sm:$0xff]  ;;  %v410_v3 = vld [vmem:[%s1678_s2 + $0x68] sm:$0xff]  ;;  %s1956_s0 = sld [smem:[#allocation18_spill]] }
  0x86   : > { %891 = vmatprep.subr.mxu0 %v412_v1  ;;  %v409_v4 = vld [vmem:[%s1678_s2 + $0x60] sm:$0xff]  ;;  %v408_v6 = vld [vmem:[%s1678_s2 + $0x58] sm:$0xff]  ;;  %v515_v8 = vld [vmem:[%s1695_s9 + $0x70] sm:$0xff] }
  0x87   : > { %892 = vmatpush3.msra.mxu0 %v412_v1  ;;  %v395_v5 = vld [vmem:[%s1670_s16] sm:$0xff]  ;;  %v516_v7 = vld [vmem:[%s1695_s9 + $0x78] sm:$0xff]  ;;  %v514_v10 = vld [vmem:[%s1695_s9 + $0x68] sm:$0xff] }
  0x88   : > { %893 = vmatprep.subr.mxu0 %v411_v2  ;;  %923 = vmatprep.mubr.f32.mxu0 %v395_v5  ;;  %v407_v9 = vld [vmem:[%s1678_s2 + $0x50] sm:$0xff]  ;;  %v406_v11 = vld [vmem:[%s1678_s2 + $0x48] sm:$0xff]  ;;  %v513_v12 = vld [vmem:[%s1695_s9 + $0x60] sm:$0xff] }
  0x89   : > { %894 = vmatpush3.msra.mxu0 %v411_v2  ;;  %926 = vmatprep.subr.mxu1 %v516_v7  ;;  %v405_v13 = vld [vmem:[%s1678_s2 + $0x40] sm:$0xff]  ;;  %v512_v14 = vld [vmem:[%s1695_s9 + $0x58] sm:$0xff]  ;;  %v511_v16 = vld [vmem:[%s1695_s9 + $0x50] sm:$0xff] }
  0x8a   : > { %895 = vmatprep.subr.mxu0 %v410_v3  ;;  %927 = vmatpush3.msra.mxu1 %v516_v7  ;;  %v404_v15 = vld [vmem:[%s1678_s2 + $0x38] sm:$0xff]  ;;  %v403_v17 = vld [vmem:[%s1678_s2 + $0x30] sm:$0xff]  ;;  %v510_v18 = vld [vmem:[%s1695_s9 + $0x48] sm:$0xff] }
  0x8b   : > { %896 = vmatpush3.msra.mxu0 %v410_v3  ;;  %928 = vmatprep.subr.mxu1 %v515_v8  ;;  %v402_v19 = vld [vmem:[%s1678_s2 + $0x28] sm:$0xff]  ;;  %v509_v20 = vld [vmem:[%s1695_s9 + $0x40] sm:$0xff]  ;;  %v508_v22 = vld [vmem:[%s1695_s9 + $0x38] sm:$0xff]  ;;  %p840_p1 = scmp.ne.s32.totalorder %s1956_s0, 1 }
  0x8c   : > { %897 = vmatprep.subr.mxu0 %v409_v4  ;;  %929 = vmatpush3.msra.mxu1 %v515_v8  ;;  %v401_v21 = vld [vmem:[%s1678_s2 + $0x20] sm:$0xff]  ;;  %v400_v23 = vld [vmem:[%s1678_s2 + $0x18] sm:$0xff]  ;;  %v507_v24 = vld [vmem:[%s1695_s9 + $0x30] sm:$0xff]  ;;  %s1957_s13 = sld [smem:[#allocation30_spill]] (!%p840_p1) }
  0x8d   : > { %898 = vmatpush3.msra.mxu0 %v409_v4  ;;  %930 = vmatprep.subr.mxu1 %v514_v10  ;;  %v399_v25 = vld [vmem:[%s1678_s2 + $0x10] sm:$0xff]  ;;  %v506_v26 = vld [vmem:[%s1695_s9 + $0x28] sm:$0xff]  ;;  %v505_v28 = vld [vmem:[%s1695_s9 + $0x20] sm:$0xff] }
  0x8e   : > { %899 = vmatprep.subr.mxu0 %v408_v6  ;;  %931 = vmatpush3.msra.mxu1 %v514_v10  ;;  %v398_v27 = vld [vmem:[%s1678_s2 + $0x8] sm:$0xff]  ;;  %v397_v29 = vld [vmem:[%s1678_s2] sm:$0xff]  ;;  %v504_v31 = vld [vmem:[%s1695_s9 + $0x18] sm:$0xff] }
  0x8f   : > { %900 = vmatpush3.msra.mxu0 %v408_v6  ;;  %932 = vmatprep.subr.mxu1 %v513_v12  ;;  %v396_v30 = vld [vmem:[%s1670_s16 + $0x8] sm:$0xff]  ;;  %v503_v32 = vld [vmem:[%s1695_s9 + $0x10] sm:$0xff]  ;;  %v501_v34 = vld [vmem:[%s1695_s9] sm:$0xff] }
  0x90   : > { %901 = vmatprep.subr.mxu0 %v407_v9  ;;  %933 = vmatpush3.msra.mxu1 %v513_v12  ;;  %v502_v33 = vld [vmem:[%s1695_s9 + $0x8] sm:$0xff]  ;;  %v839_v35 = vld [vmem:[%s385_s26] ss:$0 sm:$0xff] }
  0x91   : > { %902 = vmatpush3.msra.mxu0 %v407_v9  ;;  %934 = vmatprep.subr.mxu1 %v512_v14  ;;  %v500_v42 = vld [vmem:[%s1697_s6 + $0x8] sm:$0xff]  ;;  %v499_v44 = vld [vmem:[%s1697_s6] sm:$0xff] }
  0x92   : > { %903 = vmatprep.subr.mxu0 %v406_v11  ;;  %935 = vmatpush3.msra.mxu1 %v512_v14 }
  0x93   : > { %904 = vmatpush3.msra.mxu0 %v406_v11  ;;  %936 = vmatprep.subr.mxu1 %v511_v16 }
  0x94   : > { %905 = vmatprep.subr.mxu0 %v405_v13  ;;  %937 = vmatpush3.msra.mxu1 %v511_v16 }
  0x95   : > { %906 = vmatpush3.msra.mxu0 %v405_v13  ;;  %938 = vmatprep.subr.mxu1 %v510_v18 }
  0x96   : > { %907 = vmatprep.subr.mxu0 %v404_v15  ;;  %939 = vmatpush3.msra.mxu1 %v510_v18 }
  0x97   : > { %908 = vmatpush3.msra.mxu0 %v404_v15  ;;  %940 = vmatprep.subr.mxu1 %v509_v20 }
  0x98   : > { %909 = vmatprep.subr.mxu0 %v403_v17  ;;  %941 = vmatpush3.msra.mxu1 %v509_v20 }
  0x99   : > { %910 = vmatpush3.msra.mxu0 %v403_v17  ;;  %942 = vmatprep.subr.mxu1 %v508_v22 }
  0x9a   : > { %911 = vmatprep.subr.mxu0 %v402_v19  ;;  %943 = vmatpush3.msra.mxu1 %v508_v22 }
  0x9b   : > { %912 = vmatpush3.msra.mxu0 %v402_v19  ;;  %944 = vmatprep.subr.mxu1 %v507_v24 }
  0x9c   : > { %913 = vmatprep.subr.mxu0 %v401_v21  ;;  %945 = vmatpush3.msra.mxu1 %v507_v24 }
  0x9d   : > { %914 = vmatpush3.msra.mxu0 %v401_v21  ;;  %946 = vmatprep.subr.mxu1 %v506_v26 }
  0x9e   : > { %915 = vmatprep.subr.mxu0 %v400_v23  ;;  %947 = vmatpush3.msra.mxu1 %v506_v26 }
  0x9f   : > { %916 = vmatpush3.msra.mxu0 %v400_v23  ;;  %948 = vmatprep.subr.mxu1 %v505_v28 }
  0xa0   : > { %917 = vmatprep.subr.mxu0 %v399_v25  ;;  %949 = vmatpush3.msra.mxu1 %v505_v28 }
  0xa1   : > { %918 = vmatpush3.msra.mxu0 %v399_v25  ;;  %950 = vmatprep.subr.mxu1 %v504_v31 }
  0xa2   : > { %919 = vmatprep.subr.mxu0 %v398_v27  ;;  %951 = vmatpush3.msra.mxu1 %v504_v31 }
  0xa3   : > { %920 = vmatpush3.msra.mxu0 %v398_v27  ;;  %952 = vmatprep.subr.mxu1 %v503_v32 }
  0xa4   : > { %921 = vmatprep.subr.mxu0 %v397_v29  ;;  %953 = vmatpush3.msra.mxu1 %v503_v32 }
  0xa5   : > { %922 = vmatpush3.msra.mxu0 %v397_v29  ;;  %954 = vmatprep.subr.mxu1 %v502_v33 }
  0xa6   : > { %924 = vmatmul.mubr.f32.vlgmr.msra.gmra.mxu0 %v396_v30  ;;  %955 = vmatpush3.msra.mxu1 %v502_v33 }
  0xa7   : > { %956 = vmatprep.subr.mxu1 %v501_v34 }
  0xa8   : > { %957 = vmatpush3.msra.mxu1 %v501_v34 }
 0x166   : > { %v925_v36 = vpop.f32.mrf.mxu0 }
 0x167   : > { %v492_v37 = vadd.f32 %v925_v36, %v839_v35 }
 0x168   : > { %v486_v38 = vpop.f32.mrf.mxu0 }
 0x169   : > { %v496_v39 = vmax.f32 %v492_v37, 0.0  ;;  %v487_v40 = vadd.f32 %v839_v35, %v486_v38 }
 0x16b   : > { %498 = vst [vmem:[%s1699_s3 + $0x8] sm:$0xff] %v496_v39  ;;  %v495_v41 = vmax.f32 %v487_v40, 0.0 }
 0x16d   : > { %497 = vst [vmem:[%s1699_s3] sm:$0xff] %v495_v41  ;;  %958 = vmatprep.mubr.f32.mxu1 %v495_v41 }
 0x16e   : > { %959 = vmatmul.mubr.f32.vlgmr.msra.gmra.mxu1 %v496_v39 }
 0x22e   : > { %v960_v43 = vpop.f32.mrf.mxu1 }
 0x22f   : > { %v593_v45 = vadd.f32 %v960_v43, %v500_v42  ;;  %599 = sbr.rel (%p840_p1) target bundleno = 574 (0x23e), region = 60 }
 0x230   : > { %v583_v46 = vpop.f32.mrf.mxu1 }
 0x231   : > { %595 = vst [vmem:[%s1697_s6 + $0x8] sm:$0xff] %v593_v45  ;;  %v592_v47 = vadd.f32 %v583_v46, %v499_v44 }
 0x233   : > { %594 = vst [vmem:[%s1697_s6] sm:$0xff] %v592_v47 }
 0x234   : > { %v841_v49 = vld [vmem:[%s1957_s13] ss:$0 sm:$0xff] }
 0x238   : > { %v601_v50 = vld [vmem:[%s1697_s6 + $0x8] sm:$0xff] }
 0x239   : > { %v610_v52 = vadd.f32 %v841_v49, %v601_v50 }
 0x23a   : > { %v600_v48 = vld [vmem:[%s1697_s6] sm:$0xff] }
 0x23b   : > { %v609_v51 = vadd.f32 %v841_v49, %v600_v48  ;;  %612 = vst [vmem:[%s1697_s6 + $0x8] sm:$0xff] %v610_v52 }
 0x23d   : > { %611 = vst [vmem:[%s1697_s6] sm:$0xff] %v609_v51 }
 0x23e PF: > { %s1958_s11 = sld [smem:[#allocation19_spill]]  ;;  %s632_s24 = sshll.u32 %s1697_s6, 4  ;;  %s1764_s24 = int_to_ptr.vmem [resolvable:$true] %s632_s24 }
 0x23f   : > { %s1959_s14 = sld [smem:[#allocation33_spill]]  ;;  %s614_s1 = scalar_lea.sflag [#allocation4], %s1666_s23 }
 0x240   : > { %s1193_s26 = scalar_lea.vmem %s1764_s24, 256  ;;  %p1960_p11 = scmp.ne.s32.totalorder %s1940_s30, 0 }
 0x241   : > { %p1194_p0 = scmp.ne.s32.totalorder %s1764_s24, %s1193_s26  ;;  %s1380_s9 = smov [#allocation8]  }
 0x242   : > { %s1197_s27 = sshll.u32 %s1380_s9, 4  ;;  %s1198_s27 = int_to_ptr.vmem [resolvable:$false] %s1197_s27 }
 0x243   : > { %p1195_p4 = pnand %p1194_p0, %p1960_p11  ;;  %s1199_s7 = scalar_lea.vmem %s1198_s27, 512 }
 0x244   : > { %s853_s2 = sshll.u32 %s1958_s11, 8  ;;  %p1200_p3 = scmp.lt.s32.totalorder %s1764_s24, %s1198_s27 }
 0x245   : > { %s1761_s17 = scalar_lea.hbm %s1959_s14, %s853_s2  ;;  %p1196_p8 = pneg %p1195_p4 }
 0x246   : > { %p1201_p12 = scmp.lt.s32.totalorder %s1199_s7, %s1193_s26 }
 0x248   : > { %p1202_p5 = por %p1201_p12, %p1200_p3 }
 0x24a   : > { %p1203_p9 = pnand %p1202_p5, %p1196_p8 }
 0x24c   : > { %1206 = shalt.err (!%p1203_p9)
}
 0x24d   : > { %s1207_s6 = scalar_lea.hbm %s1761_s17, 256  ;;  %s1211_s5 = scalar_lea.hbm %s1959_s14, 512 }
 0x24e   : > { %p1208_p13 = scmp.ne.s32.totalorder %s1761_s17, %s1207_s6  ;;  %p1212_p10 = scmp.lt.s32.totalorder %s1761_s17, %s1959_s14 }
 0x24f   : > { %p1213_p1 = scmp.lt.s32.totalorder %s1211_s5, %s1207_s6 }
 0x250   : > { %p1209_p2 = pnand %p1208_p13, %p1960_p11 }
 0x251   : > { %p1214_p0 = por %p1213_p1, %p1212_p10 }
 0x252   : > { %p1210_p6 = pneg %p1209_p2 }
 0x254   : > { %p1215_p4 = pnand %p1214_p0, %p1210_p6 }
 0x256   : > { %1218 = shalt.err (!%p1215_p4)
}
 0x257   : > { %s1381_s2 = smov 128   ;;  %s1961_s19 = sld [smem:[#allocation18_spill]] }
 0x258   : > { %s1382_s15 = smov 8   ;;  %s854_s26 = sshll.u32 %s1958_s11, 2 }
 0x259   : > { %967 = dma.vmem_to_hbm [thread:$0]  (%p1960_p11), %s1764_s24, 256, %s1761_s17, %s614_s1, %s1381_s2, %s1381_s2, %s1382_s15  }
 0x25a   : > { %s650_s9 = sshll.u32 %s1699_s3, 4  ;;  %s1962_s0 = sld [smem:[#allocation34_spill]]  ;;  %s1795_s9 = int_to_ptr.vmem [resolvable:$true] %s650_s9 }
 0x25b   : > { %s1804_s30 = scalar_lea.sflag [#allocation10], %s379_s12  ;;  %s1219_s8 = scalar_lea.vmem %s1795_s9, 256 }
 0x25c   : > { %p1220_p8 = scmp.ne.s32.totalorder %s1795_s9, %s1219_s8  ;;  %s1383_s23 = smov [#allocation9]  }
 0x25d   : > { %s647_s27 = sadd.s32 %s1961_s19, %s854_s26  ;;  %s1223_s3 = sshll.u32 %s1383_s23, 4  ;;  %s1224_s3 = int_to_ptr.vmem [resolvable:$false] %s1223_s3 }
 0x25e   : > { %s848_s7 = sshll.u32 %s647_s27, 7  ;;  %p1221_p11 = pnand %p1220_p8, %p1621_p7 }
 0x25f   : > { %s1225_s11 = scalar_lea.vmem %s1224_s3, 512  ;;  %p1226_p12 = scmp.lt.s32.totalorder %s1795_s9, %s1224_s3 }
 0x260   : > { %s1800_s5 = scalar_lea.hbm %s1962_s0, %s848_s7  ;;  %p1222_p3 = pneg %p1221_p11 }
 0x261   : > { %p1227_p5 = scmp.lt.s32.totalorder %s1225_s11, %s1219_s8 }
 0x263   : > { %p1228_p9 = por %p1227_p5, %p1226_p12 }
 0x265   : > { %p1229_p13 = pnand %p1228_p9, %p1222_p3 }
 0x267   : > { %1232 = shalt.err (!%p1229_p13)
}
 0x268   : > { %s1233_s12 = scalar_lea.hbm %s1800_s5, 256  ;;  %s1237_s1 = scalar_lea.hbm %s1962_s0, 1024 }
 0x269   : > { %p1234_p2 = scmp.ne.s32.totalorder %s1800_s5, %s1233_s12  ;;  %p1238_p1 = scmp.lt.s32.totalorder %s1800_s5, %s1962_s0 }
 0x26a   : > { %p1239_p0 = scmp.lt.s32.totalorder %s1237_s1, %s1233_s12 }
 0x26b   : > { %p1235_p6 = pnand %p1234_p2, %p1621_p7 }
 0x26c   : > { %p1240_p4 = por %p1239_p0, %p1238_p1 }
 0x26d   : > { %p1236_p10 = pneg %p1235_p6 }
 0x26f   : > { %p1241_p8 = pnand %p1240_p4, %p1236_p10 }
 0x271   : > { %1244 = shalt.err (!%p1241_p8)
}
 0x272   : > { %s1384_s26 = smov 256  }
 0x273   : > { %968 = dma.vmem_to_hbm [thread:$0]  (%p1621_p7), %s1795_s9, 256, %s1800_s5, %s1804_s30, %s1381_s2, %s1384_s26, %s1382_s15  }
 0x274 PF: > { %s1963_s27 = sld [smem:[#allocation17_spill]]  ;;  %p989_p11 = scmp.ge.s32.totalorder %s1371_s10, 2 }
 0x275   : > { %s1964_s7 = sld [smem:[#allocation27_spill]] }
 0x27a   : > { %s665_s6 = sand.u32 1, %s1963_s27  }
 0x27b   : > { %p1965_p3 = scmp.ne.s32.totalorder %s1964_s7, 0  ;;  %s666_s16 = scalar_lea.sflag [#allocation4], %s665_s6 }
 0x27d   : > { %p982_p12 = pnand %p989_p11, %p1965_p3 }
 0x27f   : > { %p983_p5 = pneg %p982_p12 }
 0x281   : > { %1310 = dma.done.wait (%p983_p5), %s666_s16, 256  }
 0x282   : > { %1312 = vsyncadd (%p983_p5), %s666_s16, 4294967040  ;;  %s674_s20 = sand.u32 1, %s1319_s21   ;;  %p1966_p9 = scmp.ne.s32.totalorder %s1945_s18, 0 }
 0x283   : > { %s675_s8 = scalar_lea.sflag [#allocation10], %s674_s20 }
 0x284   : > { %p985_p13 = pnand %p989_p11, %p1966_p9 }
 0x286   : > { %p986_p2 = pneg %p985_p13 }
 0x288   : > { %1314 = dma.done.wait (%p986_p2), %s675_s8, 256  }
 0x289   : > { %1316 = vsyncadd (%p986_p2), %s675_s8, 4294967040  ;;  %s29_s10 = sadd.s32 1, %s1371_s10   ;;  %s1968_s15 = sld [smem:[#allocation15_spill]] }
 0x28a   : > { %p1837_p7 = scmp.ge.s32.totalorder %s29_s10, 6   ;;  %s1969_s23 = sld [smem:[#allocation28_spill]] }
 0x28b   : > { %s1970_s9 = sld [smem:[#allocation16_spill]]  ;;  %s1977_s21 = smov %s1323_s22 }
 0x28c   : > { %s1971_s26 = sld [smem:[#allocation25_spill]]  ;;  %s1979_s24 = smov %s1335_s25 }
 0x28d   : > { %s1972_s18 = sld [smem:[#allocation26_spill]]  ;;  %s1981_s27 = smov %s1347_s28 }
 0x28e   : > { %s1973_s30 = sld [smem:[#allocation20_spill]]  ;;  %s1982_s28 = smov %s1351_s29 }
 0x28f   : > { %s1974_s7 = sld [smem:[#allocation21_spill]]  ;;  %s1978_s22 = smov %s1968_s15 }
 0x290   : > { %s1975_s8 = sld [smem:[#allocation22_spill]] }
 0x291   : > { %s1976_s5 = sld [smem:[#allocation23_spill]]  ;;  %s1980_s25 = smov %s1970_s9 }
 0x293   : > { %s1983_s29 = smov %s1972_s18  ;;  %28 = sbr.rel (!%p1837_p7) target bundleno = 21 (0x15), region = 137 }
 0x297   : > { %s1984_s9 = smov %s1976_s5 }
 0x298   :  { %680 = vsyncpa [#allocation3], 1 }
 0x299   :  { %682 = vsyncpa [#allocation3 + $0x1], 1 }
 0x29a   :  { %683 = vsyncpa [#allocation6], 1 }
 0x29b   :  { %685 = vsyncpa [#allocation6 + $0x1], 1 }
 0x29c   :  { %686 = vsyncpa [#allocation4], 1 }
 0x29d   :  { %688 = vsyncpa [#allocation4 + $0x1], 1 }
 0x29e   :  { %689 = vsyncpa [#allocation10], 1 }
 0x29f   :  { %691 = vsyncpa [#allocation10 + $0x1], 1 }

</bundles_post_ra>
